<compile_context>
chip_gen: v6e
topology: v6e:2x2x1
jax: 0.10.0
libtpu: 0.0.40
codegen_flags: <defaults>
</compile_context>

<pallas_src>
import functools
import math

import jax
import jax.numpy as jnp
import numpy as np
from jax.experimental import pallas as pl
from jax.experimental.pallas import tpu as pltpu


def _round_up(x, m):
    return (x + m - 1) // m * m


# --------------------------------------------------------------------------
# Kernel: sequential opinion-dynamics recursion, TB time steps per grid step.
# Refs:
#   logit_x0_ref : (1, Np)  f32   -- learned logit(X0)
#   mc_ref       : (TB, Kp, Np) bf16 -- folded operator (degree on diagonal)
#   x_out_ref    : (TB, Np) f32   -- X[t0+1 .. t0+TB]
#   x_sc         : (1, Np)  f32 VMEM scratch -- carried X[t] across grid steps
# --------------------------------------------------------------------------
def x_dyn_kernel(logit_x0_ref, mc_ref, x_out_ref, x_sc, *, tb, kp, np_pad, unroll):
    g = pl.program_id(0)

    @pl.when(g == 0)
    def _():
        # X0 = sigmoid(logit_X0)
        x_sc[...] = jax.nn.sigmoid(logit_x0_ref[...])

    def step(i, x):                                    # x: (1, Np) f32
        m = mc_ref[i].astype(jnp.float32)              # (Kp, Np) bf16 -> f32 in VMEM
        xl = x if kp == np_pad else x[:, :kp]          # (1, Kp): only real rows contract
        # degree is already folded into the diagonal of m
        mx = jnp.dot(xl, m, preferred_element_type=jnp.float32)   # (1, Np)
        x_new = jnp.clip(x + mx, 1e-5, 1.0 - 1e-5)
        x_out_ref[pl.ds(i, 1), :] = x_new
        return x_new

    x_last = jax.lax.fori_loop(0, tb, step, x_sc[...], unroll=unroll)
    x_sc[...] = x_last                                 # carry X to next grid step


# --------------------------------------------------------------------------
# Per-chip-generation VMEM sizing (v5e/v6e: 128 MiB, v7x: 64 MiB per TC).
# --------------------------------------------------------------------------
def _vmem_budget_and_limit():
    try:
        cap = int(pltpu.get_tpu_info().vmem_capacity_bytes)
    except Exception:
        cap = 64 << 20                                  # conservative (v7x size)
    if cap >= (96 << 20):                               # v5e / v6e
        return 40 << 20, 96 << 20
    return 14 << 20, 40 << 20                           # v7x: headroom inside 64 MiB


def choose_tb(steps, kp, npad, itemsize, vmem_budget_bytes):
    """Time-batch: fit the double-buffered Mc block, keep tb a multiple of 8
    whenever grid > 1, and minimize time-padding waste."""
    per_step = 2 * kp * npad * itemsize + 2 * npad * 4  # Mc + out, double buffered
    tb_max = max(1, vmem_budget_bytes // per_step)
    if tb_max >= steps:
        return int(steps)                               # single grid step, no padding
    tb_max = max(8, (tb_max // 8) * 8)                  # (8,128) sublane rule when grid > 1
    best_tb, best_key = 8, None
    for tb in range(8, tb_max + 1, 8):
        key = (_round_up(steps, tb), -tb)               # min padded steps, then fewest grid steps
        if best_key is None or key < best_key:
            best_key, best_tb = key, tb
    return int(best_tb)


# --------------------------------------------------------------------------
# One-time precompute of the fixed folded operator (independent of the learned
# parameters logit_X0/theta).  Call ONCE at module-init time and cache; every
# forward() reuses the result.
# --------------------------------------------------------------------------
def prepare_operator(M_plus, M_minus, mu_plus, mu_minus, T, N, *, op_dtype=jnp.bfloat16):
    steps = T - 1
    Np = _round_up(N, 128)                              # lane / output dim
    sub = 16 if op_dtype == jnp.bfloat16 else 8
    Kp = min(Np, _round_up(N, sub))                     # contraction (row) dim only

    Mp = M_plus[:steps].astype(jnp.float32)
    Mm = M_minus[:steps].astype(jnp.float32)
    Mc = (mu_plus * (Mp + jnp.swapaxes(Mp, 1, 2))
          - mu_minus * (Mm + jnp.swapaxes(Mm, 1, 2)))   # (steps, N, N), symmetric
    deg = Mc.sum(axis=2)                                # (steps, N) combined degree
    idx = jnp.arange(N)
    Mc = Mc.at[:, idx, idx].add(-deg)                   # fold degree into the diagonal

    vmem_budget, vmem_cap_limit = _vmem_budget_and_limit()
    itemsize = jnp.dtype(op_dtype).itemsize
    tb = choose_tb(steps, Kp, Np, itemsize, vmem_budget)
    steps_p = _round_up(steps, tb)

    Mc = jnp.pad(Mc, ((0, steps_p - steps), (0, Kp - N), (0, Np - N))).astype(op_dtype)

    vmem_need = (2 * tb * Kp * Np * itemsize            # Mc double buffer
                 + 2 * tb * Np * 4                      # out double buffer
                 + 3 * Np * 4)                          # logit block + x scratch
    vmem_limit = int(min(vmem_cap_limit, max(8 << 20, 2 * vmem_need)))

    return dict(Mc=Mc, tb=tb, steps=steps, steps_p=steps_p, Kp=Kp, Np=Np, N=N,
                T=T, vmem_limit=vmem_limit)


# --------------------------------------------------------------------------
# Wrapper: the module's forward().  `op` is the cached prepare_operator() result.
# --------------------------------------------------------------------------
def forward(logit_X0, theta, op, t_idx, u_idx, v_idx, *, rho):
    Mc, tb, steps, steps_p, Kp, Np, N = (op[k] for k in
                                         ("Mc", "tb", "steps", "steps_p", "Kp", "Np", "N"))
    grid = steps_p // tb
    unroll = True if tb <= 8 else 8

    logit_pad = jnp.pad(logit_X0.astype(jnp.float32), (0, Np - N)).reshape(1, Np)

    x_rest = pl.pallas_call(
        functools.partial(x_dyn_kernel, tb=tb, kp=Kp, np_pad=Np, unroll=unroll),
        out_shape=jax.ShapeDtypeStruct((steps_p, Np), jnp.float32),
        grid_spec=pltpu.PrefetchScalarGridSpec(
            num_scalar_prefetch=0,
            grid=(grid,),
            in_specs=[
                pl.BlockSpec((1, Np), lambda g: (0, 0)),            # logit_X0
                pl.BlockSpec((tb, Kp, Np), lambda g: (g, 0, 0)),    # Mc[g*tb:(g+1)*tb]
            ],
            out_specs=pl.BlockSpec((tb, Np), lambda g: (g, 0)),     # X[g*tb+1 : ...]
            scratch_shapes=[pltpu.VMEM((1, Np), jnp.float32)],      # carried X[t]
        ),
        compiler_params=pltpu.CompilerParams(
            dimension_semantics=("arbitrary",),                     # sequential carry
            vmem_limit_bytes=op["vmem_limit"]),
    )(logit_pad, Mc)

    X0 = jax.nn.sigmoid(logit_X0)
    X = jnp.concatenate([X0[None, :], x_rest[:steps, :N]], axis=0)  # (T, N)

    # epsilon parameters + kappa: plain JAX so XLA fuses gather + abs + sigmoid
    eps_plus = jax.nn.sigmoid(theta[0]) / 2.0
    eps_minus = 0.5 + jax.nn.sigmoid(theta[1]) / 2.0
    diff_X = X[t_idx, u_idx] - X[t_idx, v_idx]
    # TODO(synk): kappa_from_epsilon is not defined in the provided source; using the
    #             standard bounded-confidence form kappa = sigmoid(rho * (eps - |dX|)).
    kappa_plus = jax.nn.sigmoid(rho * (eps_plus - jnp.abs(diff_X)))
    kappa_minus = jax.nn.sigmoid(-rho * (eps_minus - jnp.abs(diff_X)))
    return X, kappa_plus, kappa_minus


# --------------------------------------------------------------------------
# Pure-JAX reference (mirrors the torch code) for the correctness check.
# --------------------------------------------------------------------------
def x_dynamics_ref(X0, Mp, Mm, mu_plus, mu_minus, T):
    Xs = [X0]
    for t in range(T - 1):
        x = Xs[-1]

        def upd(M, mu):
            A = (x * M).sum(axis=1)
            B = (x * M.T).sum(axis=0)
            C = (x * M.T).sum(axis=1)
            D = (x * M).sum(axis=0)
            return mu * (A - B + C - D)

        xn = jnp.clip(x + upd(Mp[t], mu_plus) - upd(Mm[t], mu_minus), 1e-5, 1.0 - 1e-5)
        Xs.append(xn)
    return jnp.stack(Xs)


if __name__ == "__main__":
    T, N, edge_per_t = 8, 32, 16
    eps0_plus, eps0_minus, mu_plus, mu_minus, rho = 0.2, 0.8, 0.1, 0.05, 8.0

    key = jax.random.PRNGKey(0)
    k1, k2, k3, k4, k5 = jax.random.split(key, 5)

    # synthetic edges (T, edge_per_t): [u, v, s_plus, s_minus]
    u_e = jax.random.randint(k1, (T, edge_per_t), 0, N)
    v_e = jax.random.randint(k2, (T, edge_per_t), 0, N)
    s_plus = jax.random.bernoulli(k3, 0.6, (T, edge_per_t)).astype(jnp.float32)
    s_minus = jax.random.bernoulli(k4, 0.3, (T, edge_per_t)).astype(jnp.float32)

    # flattened uvst (convert_edges_uvst equivalent)
    t_idx = jnp.repeat(jnp.arange(T, dtype=jnp.int32), edge_per_t)
    u_idx = u_e.reshape(-1).astype(jnp.int32)
    v_idx = v_e.reshape(-1).astype(jnp.int32)
    sp_flat = s_plus.reshape(-1)
    sm_flat = s_minus.reshape(-1)

    # dense coo matrices (edges_coo_mu / count_s_from_edge with mu=1 == scatter-add of s)
    M_plus = jnp.zeros((T, N, N), jnp.float32).at[t_idx, u_idx, v_idx].add(sp_flat)
    M_minus = jnp.zeros((T, N, N), jnp.float32).at[t_idx, u_idx, v_idx].add(sm_flat)

    # parameters (deterministic init)
    X0 = jax.random.uniform(k5, (N,), jnp.float32, minval=0.05, maxval=0.95)
    logit_X0 = jnp.log(X0 / (1.0 - X0))
    logit = lambda p: math.log(p / (1.0 - p))
    theta = jnp.array([logit(2 * eps0_plus), logit(2 * (eps0_minus - 0.5))], jnp.float32)

    # one-time operator build (cache this across training steps; it only depends
    # on the module buffers M_plus/M_minus/mu, not on the learned parameters)
    op = prepare_operator(M_plus, M_minus, mu_plus, mu_minus, T, N)

    X, kappa_plus, kappa_minus = forward(
        logit_X0, theta, op, t_idx, u_idx, v_idx, rho=rho)
    jax.block_until_ready((X, kappa_plus, kappa_minus))

    # ---- correctness checks -------------------------------------------------
    # (1) tight: against the same bf16-quantized folded operator, computed with
    #     exact f32 elementwise math -> validates the kernel recursion itself.
    Mc_q = np.asarray(op["Mc"][: T - 1, :N, :N].astype(jnp.float32))
    X_q = [np.asarray(jax.nn.sigmoid(logit_X0), dtype=np.float32)]
    for t in range(T - 1):
        x = X_q[-1]
        X_q.append(np.clip(x + (x[:, None] * Mc_q[t]).sum(axis=0), 1e-5, 1.0 - 1e-5))
    X_q = np.stack(X_q)
    np.testing.assert_allclose(np.asarray(X), X_q, rtol=1e-3, atol=1e-3)

    # (2) loose: against the torch-mirroring f32 reference -> validates the
    #     forward semantics; the only extra error is the bf16 storage of Mc.
    X_ref = np.asarray(x_dynamics_ref(X0, M_plus, M_minus, mu_plus, mu_minus, T))
    np.testing.assert_allclose(np.asarray(X), X_ref, rtol=2e-2, atol=1e-2)

    dX_ref = (X_ref[np.asarray(t_idx), np.asarray(u_idx)]
              - X_ref[np.asarray(t_idx), np.asarray(v_idx)])
    ep = float(jax.nn.sigmoid(theta[0])) / 2.0
    em = 0.5 + float(jax.nn.sigmoid(theta[1])) / 2.0
    kp_ref = np.asarray(jax.nn.sigmoid(rho * (ep - np.abs(dX_ref))))
    km_ref = np.asarray(jax.nn.sigmoid(-rho * (em - np.abs(dX_ref))))
    np.testing.assert_allclose(np.asarray(kappa_plus), kp_ref, rtol=5e-2, atol=3e-2)
    np.testing.assert_allclose(np.asarray(kappa_minus), km_ref, rtol=5e-2, atol=3e-2)

    print("KERNEL_OK")
</pallas_src>

<mosaic_0001>
module attributes {stable_mosaic.version = 11 : i64} {
  func.func @x_dyn_kernel(%arg0: i32, %arg1: memref<1x128xf32, #tpu.memory_space<vmem>>, %arg2: memref<7x32x128xbf16, #tpu.memory_space<vmem>>, %arg3: memref<7x128xf32, #tpu.memory_space<vmem>>, %arg4: memref<1x128xf32, #tpu.memory_space<vmem>>) attributes {dimension_semantics = [#tpu.dimension_semantics<arbitrary>], iteration_bounds = array<i64: 1>, scalar_prefetch = 0 : i64, scratch_operands = 1 : i64, tpu.core_type = #tpu.core_type<tc>, window_params = [{pipeline_mode = #tpu.pipeline_mode<synchronous>, transform_indices = @transform_0, window_bounds = array<i64: 1, 128>}, {transform_indices = @transform_1, window_bounds = array<i64: 7, 32, 128>}, {transform_indices = @transform_2, window_bounds = array<i64: 7, 128>}]} {
    %c0_i32 = arith.constant 0 : i32
    %0 = arith.cmpi eq, %arg0, %c0_i32 : i32
    %1 = arith.extui %0 : i1 to i32
    %c0_i32_0 = arith.constant 0 : i32
    %2 = arith.cmpi ne, %1, %c0_i32_0 : i32
    scf.if %2 {
      %c0_46 = arith.constant 0 : index
      %c0_47 = arith.constant 0 : index
      %96 = vector.load %arg1[%c0_46, %c0_47] : memref<1x128xf32, #tpu.memory_space<vmem>>, vector<1x128xf32>
      %97 = arith.negf %96 : vector<1x128xf32>
      %98 = math.exp %97 : vector<1x128xf32>
      %cst_48 = arith.constant 1.000000e+00 : f32
      %99 = vector.broadcast %cst_48 : f32 to vector<1x128xf32>
      %100 = arith.addf %99, %98 : vector<1x128xf32>
      %101 = arith.divf %99, %100 : vector<1x128xf32>
      %c0_49 = arith.constant 0 : index
      %c0_50 = arith.constant 0 : index
      %102 = vector.load %arg4[%c0_49, %c0_50] : memref<1x128xf32, #tpu.memory_space<vmem>>, vector<1x128xf32>
      tpu.vector_store %arg4[%c0_49, %c0_50], %101 {strides = array<i32>} : memref<1x128xf32, #tpu.memory_space<vmem>>, vector<1x128xf32>,
    } else {
    }
    %c0 = arith.constant 0 : index
    %c0_1 = arith.constant 0 : index
    %3 = vector.load %arg4[%c0, %c0_1] : memref<1x128xf32, #tpu.memory_space<vmem>>, vector<1x128xf32>
    %c0_i32_2 = arith.constant 0 : i32
    %4 = arith.index_cast %c0_i32_2 : i32 to index
    %c0_3 = arith.constant 0 : index
    %c0_4 = arith.constant 0 : index
    %5 = vector.load %arg2[%4, %c0_3, %c0_4] : memref<7x32x128xbf16, #tpu.memory_space<vmem>>, vector<1x32x128xbf16>
    %6 = vector.shape_cast %5 : vector<1x32x128xbf16> to vector<32x128xbf16>
    %7 = arith.extf %6 : vector<32x128xbf16> to vector<32x128xf32>
    %8 = vector.extract_strided_slice %3 {offsets = [0, 0], sizes = [1, 32], strides = [1, 1]} : vector<1x128xf32> to vector<1x32xf32>
    %cst = arith.constant dense<0.000000e+00> : vector<1x128xf32>
    %9 = tpu.matmul %8, %7, %cst {dimension_numbers = #tpu.dot_dimension_numbers<[1], [0], [0], [1], [0, 0, 1, 1], [], []>} : vector<1x32xf32>, vector<32x128xf32>, vector<1x128xf32> -> vector<1x128xf32>
    %10 = arith.addf %3, %9 : vector<1x128xf32>
    %cst_5 = arith.constant 9.99999974E-6 : f32
    %cst_6 = arith.constant 0.999989986 : f32
    %11 = vector.broadcast %cst_5 : f32 to vector<1x128xf32>
    %12 = arith.maximumf %11, %10 : vector<1x128xf32>
    %13 = vector.broadcast %cst_6 : f32 to vector<1x128xf32>
    %14 = arith.minimumf %13, %12 : vector<1x128xf32>
    %15 = arith.index_cast %c0_i32_2 : i32 to index
    %c0_7 = arith.constant 0 : index
    %16 = vector.load %arg3[%15, %c0_7] : memref<7x128xf32, #tpu.memory_space<vmem>>, vector<1x128xf32>
    tpu.vector_store %arg3[%15, %c0_7], %14 {strides = array<i32>} : memref<7x128xf32, #tpu.memory_space<vmem>>, vector<1x128xf32>,
    %c1_i32 = arith.constant 1 : i32
    %17 = arith.index_cast %c1_i32 : i32 to index
    %c0_8 = arith.constant 0 : index
    %c0_9 = arith.constant 0 : index
    %18 = vector.load %arg2[%17, %c0_8, %c0_9] : memref<7x32x128xbf16, #tpu.memory_space<vmem>>, vector<1x32x128xbf16>
    %19 = vector.shape_cast %18 : vector<1x32x128xbf16> to vector<32x128xbf16>
    %20 = arith.extf %19 : vector<32x128xbf16> to vector<32x128xf32>
    %21 = vector.extract_strided_slice %14 {offsets = [0, 0], sizes = [1, 32], strides = [1, 1]} : vector<1x128xf32> to vector<1x32xf32>
    %cst_10 = arith.constant dense<0.000000e+00> : vector<1x128xf32>
    %22 = tpu.matmul %21, %20, %cst_10 {dimension_numbers = #tpu.dot_dimension_numbers<[1], [0], [0], [1], [0, 0, 1, 1], [], []>} : vector<1x32xf32>, vector<32x128xf32>, vector<1x128xf32> -> vector<1x128xf32>
    %23 = arith.addf %14, %22 : vector<1x128xf32>
    %cst_11 = arith.constant 9.99999974E-6 : f32
    %cst_12 = arith.constant 0.999989986 : f32
    %24 = vector.broadcast %cst_11 : f32 to vector<1x128xf32>
    %25 = arith.maximumf %24, %23 : vector<1x128xf32>
    %26 = vector.broadcast %cst_12 : f32 to vector<1x128xf32>
    %27 = arith.minimumf %26, %25 : vector<1x128xf32>
    %28 = arith.index_cast %c1_i32 : i32 to index
    %c0_13 = arith.constant 0 : index
    %29 = vector.load %arg3[%28, %c0_13] : memref<7x128xf32, #tpu.memory_space<vmem>>, vector<1x128xf32>
    tpu.vector_store %arg3[%28, %c0_13], %27 {strides = array<i32>} : memref<7x128xf32, #tpu.memory_space<vmem>>, vector<1x128xf32>,
    %c2_i32 = arith.constant 2 : i32
    %30 = arith.index_cast %c2_i32 : i32 to index
    %c0_14 = arith.constant 0 : index
    %c0_15 = arith.constant 0 : index
    %31 = vector.load %arg2[%30, %c0_14, %c0_15] : memref<7x32x128xbf16, #tpu.memory_space<vmem>>, vector<1x32x128xbf16>
    %32 = vector.shape_cast %31 : vector<1x32x128xbf16> to vector<32x128xbf16>
    %33 = arith.extf %32 : vector<32x128xbf16> to vector<32x128xf32>
    %34 = vector.extract_strided_slice %27 {offsets = [0, 0], sizes = [1, 32], strides = [1, 1]} : vector<1x128xf32> to vector<1x32xf32>
    %cst_16 = arith.constant dense<0.000000e+00> : vector<1x128xf32>
    %35 = tpu.matmul %34, %33, %cst_16 {dimension_numbers = #tpu.dot_dimension_numbers<[1], [0], [0], [1], [0, 0, 1, 1], [], []>} : vector<1x32xf32>, vector<32x128xf32>, vector<1x128xf32> -> vector<1x128xf32>
    %36 = arith.addf %27, %35 : vector<1x128xf32>
    %cst_17 = arith.constant 9.99999974E-6 : f32
    %cst_18 = arith.constant 0.999989986 : f32
    %37 = vector.broadcast %cst_17 : f32 to vector<1x128xf32>
    %38 = arith.maximumf %37, %36 : vector<1x128xf32>
    %39 = vector.broadcast %cst_18 : f32 to vector<1x128xf32>
    %40 = arith.minimumf %39, %38 : vector<1x128xf32>
    %41 = arith.index_cast %c2_i32 : i32 to index
    %c0_19 = arith.constant 0 : index
    %42 = vector.load %arg3[%41, %c0_19] : memref<7x128xf32, #tpu.memory_space<vmem>>, vector<1x128xf32>
    tpu.vector_store %arg3[%41, %c0_19], %40 {strides = array<i32>} : memref<7x128xf32, #tpu.memory_space<vmem>>, vector<1x128xf32>,
    %c3_i32 = arith.constant 3 : i32
    %43 = arith.index_cast %c3_i32 : i32 to index
    %c0_20 = arith.constant 0 : index
    %c0_21 = arith.constant 0 : index
    %44 = vector.load %arg2[%43, %c0_20, %c0_21] : memref<7x32x128xbf16, #tpu.memory_space<vmem>>, vector<1x32x128xbf16>
    %45 = vector.shape_cast %44 : vector<1x32x128xbf16> to vector<32x128xbf16>
    %46 = arith.extf %45 : vector<32x128xbf16> to vector<32x128xf32>
    %47 = vector.extract_strided_slice %40 {offsets = [0, 0], sizes = [1, 32], strides = [1, 1]} : vector<1x128xf32> to vector<1x32xf32>
    %cst_22 = arith.constant dense<0.000000e+00> : vector<1x128xf32>
    %48 = tpu.matmul %47, %46, %cst_22 {dimension_numbers = #tpu.dot_dimension_numbers<[1], [0], [0], [1], [0, 0, 1, 1], [], []>} : vector<1x32xf32>, vector<32x128xf32>, vector<1x128xf32> -> vector<1x128xf32>
    %49 = arith.addf %40, %48 : vector<1x128xf32>
    %cst_23 = arith.constant 9.99999974E-6 : f32
    %cst_24 = arith.constant 0.999989986 : f32
    %50 = vector.broadcast %cst_23 : f32 to vector<1x128xf32>
    %51 = arith.maximumf %50, %49 : vector<1x128xf32>
    %52 = vector.broadcast %cst_24 : f32 to vector<1x128xf32>
    %53 = arith.minimumf %52, %51 : vector<1x128xf32>
    %54 = arith.index_cast %c3_i32 : i32 to index
    %c0_25 = arith.constant 0 : index
    %55 = vector.load %arg3[%54, %c0_25] : memref<7x128xf32, #tpu.memory_space<vmem>>, vector<1x128xf32>
    tpu.vector_store %arg3[%54, %c0_25], %53 {strides = array<i32>} : memref<7x128xf32, #tpu.memory_space<vmem>>, vector<1x128xf32>,
    %c4_i32 = arith.constant 4 : i32
    %56 = arith.index_cast %c4_i32 : i32 to index
    %c0_26 = arith.constant 0 : index
    %c0_27 = arith.constant 0 : index
    %57 = vector.load %arg2[%56, %c0_26, %c0_27] : memref<7x32x128xbf16, #tpu.memory_space<vmem>>, vector<1x32x128xbf16>
    %58 = vector.shape_cast %57 : vector<1x32x128xbf16> to vector<32x128xbf16>
    %59 = arith.extf %58 : vector<32x128xbf16> to vector<32x128xf32>
    %60 = vector.extract_strided_slice %53 {offsets = [0, 0], sizes = [1, 32], strides = [1, 1]} : vector<1x128xf32> to vector<1x32xf32>
    %cst_28 = arith.constant dense<0.000000e+00> : vector<1x128xf32>
    %61 = tpu.matmul %60, %59, %cst_28 {dimension_numbers = #tpu.dot_dimension_numbers<[1], [0], [0], [1], [0, 0, 1, 1], [], []>} : vector<1x32xf32>, vector<32x128xf32>, vector<1x128xf32> -> vector<1x128xf32>
    %62 = arith.addf %53, %61 : vector<1x128xf32>
    %cst_29 = arith.constant 9.99999974E-6 : f32
    %cst_30 = arith.constant 0.999989986 : f32
    %63 = vector.broadcast %cst_29 : f32 to vector<1x128xf32>
    %64 = arith.maximumf %63, %62 : vector<1x128xf32>
    %65 = vector.broadcast %cst_30 : f32 to vector<1x128xf32>
    %66 = arith.minimumf %65, %64 : vector<1x128xf32>
    %67 = arith.index_cast %c4_i32 : i32 to index
    %c0_31 = arith.constant 0 : index
    %68 = vector.load %arg3[%67, %c0_31] : memref<7x128xf32, #tpu.memory_space<vmem>>, vector<1x128xf32>
    tpu.vector_store %arg3[%67, %c0_31], %66 {strides = array<i32>} : memref<7x128xf32, #tpu.memory_space<vmem>>, vector<1x128xf32>,
    %c5_i32 = arith.constant 5 : i32
    %69 = arith.index_cast %c5_i32 : i32 to index
    %c0_32 = arith.constant 0 : index
    %c0_33 = arith.constant 0 : index
    %70 = vector.load %arg2[%69, %c0_32, %c0_33] : memref<7x32x128xbf16, #tpu.memory_space<vmem>>, vector<1x32x128xbf16>
    %71 = vector.shape_cast %70 : vector<1x32x128xbf16> to vector<32x128xbf16>
    %72 = arith.extf %71 : vector<32x128xbf16> to vector<32x128xf32>
    %73 = vector.extract_strided_slice %66 {offsets = [0, 0], sizes = [1, 32], strides = [1, 1]} : vector<1x128xf32> to vector<1x32xf32>
    %cst_34 = arith.constant dense<0.000000e+00> : vector<1x128xf32>
    %74 = tpu.matmul %73, %72, %cst_34 {dimension_numbers = #tpu.dot_dimension_numbers<[1], [0], [0], [1], [0, 0, 1, 1], [], []>} : vector<1x32xf32>, vector<32x128xf32>, vector<1x128xf32> -> vector<1x128xf32>
    %75 = arith.addf %66, %74 : vector<1x128xf32>
    %cst_35 = arith.constant 9.99999974E-6 : f32
    %cst_36 = arith.constant 0.999989986 : f32
    %76 = vector.broadcast %cst_35 : f32 to vector<1x128xf32>
    %77 = arith.maximumf %76, %75 : vector<1x128xf32>
    %78 = vector.broadcast %cst_36 : f32 to vector<1x128xf32>
    %79 = arith.minimumf %78, %77 : vector<1x128xf32>
    %80 = arith.index_cast %c5_i32 : i32 to index
    %c0_37 = arith.constant 0 : index
    %81 = vector.load %arg3[%80, %c0_37] : memref<7x128xf32, #tpu.memory_space<vmem>>, vector<1x128xf32>
    tpu.vector_store %arg3[%80, %c0_37], %79 {strides = array<i32>} : memref<7x128xf32, #tpu.memory_space<vmem>>, vector<1x128xf32>,
    %c6_i32 = arith.constant 6 : i32
    %82 = arith.index_cast %c6_i32 : i32 to index
    %c0_38 = arith.constant 0 : index
    %c0_39 = arith.constant 0 : index
    %83 = vector.load %arg2[%82, %c0_38, %c0_39] : memref<7x32x128xbf16, #tpu.memory_space<vmem>>, vector<1x32x128xbf16>
    %84 = vector.shape_cast %83 : vector<1x32x128xbf16> to vector<32x128xbf16>
    %85 = arith.extf %84 : vector<32x128xbf16> to vector<32x128xf32>
    %86 = vector.extract_strided_slice %79 {offsets = [0, 0], sizes = [1, 32], strides = [1, 1]} : vector<1x128xf32> to vector<1x32xf32>
    %cst_40 = arith.constant dense<0.000000e+00> : vector<1x128xf32>
    %87 = tpu.matmul %86, %85, %cst_40 {dimension_numbers = #tpu.dot_dimension_numbers<[1], [0], [0], [1], [0, 0, 1, 1], [], []>} : vector<1x32xf32>, vector<32x128xf32>, vector<1x128xf32> -> vector<1x128xf32>
    %88 = arith.addf %79, %87 : vector<1x128xf32>
    %cst_41 = arith.constant 9.99999974E-6 : f32
    %cst_42 = arith.constant 0.999989986 : f32
    %89 = vector.broadcast %cst_41 : f32 to vector<1x128xf32>
    %90 = arith.maximumf %89, %88 : vector<1x128xf32>
    %91 = vector.broadcast %cst_42 : f32 to vector<1x128xf32>
    %92 = arith.minimumf %91, %90 : vector<1x128xf32>
    %93 = arith.index_cast %c6_i32 : i32 to index
    %c0_43 = arith.constant 0 : index
    %94 = vector.load %arg3[%93, %c0_43] : memref<7x128xf32, #tpu.memory_space<vmem>>, vector<1x128xf32>
    tpu.vector_store %arg3[%93, %c0_43], %92 {strides = array<i32>} : memref<7x128xf32, #tpu.memory_space<vmem>>, vector<1x128xf32>,
    %c7_i32 = arith.constant 7 : i32
    %c0_44 = arith.constant 0 : index
    %c0_45 = arith.constant 0 : index
    %95 = vector.load %arg4[%c0_44, %c0_45] : memref<1x128xf32, #tpu.memory_space<vmem>>, vector<1x128xf32>
    tpu.vector_store %arg4[%c0_44, %c0_45], %92 {strides = array<i32>} : memref<1x128xf32, #tpu.memory_space<vmem>>, vector<1x128xf32>,
    return
  }
  func.func @transform_0(%arg0: i32) -> (i32, i32) {
    %c0_i32 = arith.constant 0 : i32
    %c0_i32_0 = arith.constant 0 : i32
    %c0_i32_1 = arith.constant 0 : i32
    return %c0_i32, %c0_i32_0 : i32, i32
  }
  func.func @transform_1(%arg0: i32) -> (i32, i32, i32) {
    %c0_i32 = arith.constant 0 : i32
    %c0_i32_0 = arith.constant 0 : i32
    %c0_i32_1 = arith.constant 0 : i32
    return %arg0, %c0_i32, %c0_i32_0 : i32, i32, i32
  }
  func.func @transform_2(%arg0: i32) -> (i32, i32) {
    %c0_i32 = arith.constant 0 : i32
    %c0_i32_0 = arith.constant 0 : i32
    return %arg0, %c0_i32 : i32, i32
  }
}

</mosaic_0001>

<bundles_post_ra>
// kernel: tpu_custom_call.1
= control target key start
LH: loop header
LB: loop body
LE: loop exit
PB: predicated region body
PF: predicated region fallthrough
CT: control target
= control target key end

     0   :  { %7 = vsyncpa [#allocation4], 0  ;;  %s1010_s0 = inlined_call_operand.hbm [shape: f32[1,128], index: 0, kind: input, shape index: {}]   ;;  %s1011_s1 = inlined_call_operand.hbm [shape: bf16[7,32,128], index: 1, kind: input, shape index: {}]   ;;  %s1012_s2 = inlined_call_operand.hbm [shape: f32[7,128], index: 2, kind: output, shape index: {}]  }
   0x1   :  { %8 = vsyncpa [#allocation7], 0 }
   0x2   :  { %9 = vsyncpa [#allocation5], 0  ;;  %s930_s9 = smov [#allocation3]   ;;  %s931_s11 = smov [#allocation6]  }
   0x3   :  { %s16_s10 = sshll.u32 %s930_s9, 4  ;;  %s25_s12 = sshll.u32 %s931_s11, 4  ;;  %s17_s10 = int_to_ptr.vmem [resolvable:$true] %s16_s10  ;;  %s26_s12 = int_to_ptr.vmem [resolvable:$true] %s25_s12 }
   0x4   :  { %s872_s13 = scalar_lea.vmem %s17_s10, 16  ;;  %s876_s14 = scalar_lea.vmem %s17_s10, 32 }
   0x5   :  { %p873_p0 = scmp.ne.s32.totalorder %s17_s10, %s872_s13  ;;  %p877_p1 = scmp.lt.s32.totalorder %s17_s10, %s17_s10 }
   0x6   :  { %p878_p2 = scmp.lt.s32.totalorder %s876_s14, %s872_s13 }
   0x8   :  { %p879_p3 = por %p878_p2, %p877_p1 }
   0xa   :  { %p880_p4 = pnand %p879_p3, %p873_p0 }
   0xc   :  { %883 = shalt.err (!%p880_p4)
}
   0xd   :  { %19 = dma.hbm_to_vmem [thread:$0]  %s1010_s0, 16, %s17_s10, [#allocation4]  }
   0xe   :  { %s892_s17 = scalar_lea.vmem %s26_s12, 1792  ;;  %p897_p6 = scmp.lt.s32.totalorder %s26_s12, %s26_s12 }
   0xf   :  { %p893_p5 = scmp.ne.s32.totalorder %s26_s12, %s892_s17  ;;  %p898_p7 = scmp.lt.s32.totalorder %s892_s17, %s892_s17 }
  0x11   :  { %p899_p8 = por %p898_p7, %p897_p6 }
  0x13   :  { %p900_p9 = pnand %p899_p8, %p893_p5 }
  0x15   :  { %903 = shalt.err (!%p900_p9)
}
  0x16   :  { %s932_s18 = smov 64   ;;  %s933_s19 = smov 4  }
  0x17   :  { %31 = dma.hbm_to_vmem [thread:$0]  %s1011_s1, 1792, %s26_s12, [#allocation7], %s932_s18, %s932_s18, %s933_s19  }
  0x18   :  { %924 = dma.done.wait [#allocation4], 16  }
  0x19   :  { %925 = vsyncadd [#allocation4], 4294967280 }
  0x1a   :  { %926 = dma.done.wait [#allocation7], 1792  }
  0x1b   :  { %927 = vsyncadd [#allocation7], 4294965504  ;;  %v934_v0 = vmov 0.0   ;;  %vm935_vm0 = vmmov 0   ;;  %v734_v1 = vld [vmem:[#allocation6 + $0x8] sm:$0xff]   ;;  %v679_v2 = vld [vmem:[#allocation6] sm:$0xff]  }
  0x1c   :  { %776 = vmatprep.subr.mxu0 %v934_v0  ;;  %784 = vmatprep.mubr.msk.f32.mxu0 %vm935_vm0, %v934_v0  ;;  %v42_v3 = vld [vmem:[#allocation3] sm:$0x1]  ;;  %v684_v4 = vunpack.c.l.bf16 %v734_v1  ;;  %v685_v5 = vunpack.c.h.bf16 %v734_v1  ;;  %v681_v7 = vunpack.c.h.bf16 %v679_v2  ;;  %v680_v8 = vunpack.c.l.bf16 %v679_v2  ;;  %v687_v16 = vld [vmem:[#allocation6 + $0x10] sm:$0xff]   ;;  %v736_v24 = vld [vmem:[#allocation6 + $0x28] sm:$0xff]   ;;  %s936_s0 = smov [#allocation8]  }
  0x1d   :  { %787 = vmatprep.subr.mxu1 %v934_v0  ;;  %795 = vmatprep.mubr.msk.f32.mxu1 %vm935_vm0, %v934_v0  ;;  %v670_v6 = vmul.f32 -1.442695, %v42_v3  ;;  %vm59_vm1 = vcmask 261120   ;;  %v735_v13 = vld [vmem:[#allocation6 + $0x18] sm:$0xff]   ;;  %v689_v17 = vunpack.c.h.bf16 %v687_v16  ;;  %v688_v18 = vunpack.c.l.bf16 %v687_v16  ;;  %v695_v27 = vld [vmem:[#allocation6 + $0x20] sm:$0xff]   ;;  %v703_v38 = vld [vmem:[#allocation6 + $0x30] sm:$0xff]  }
  0x1e   :  { %777 = vmatpush3.msra.mxu0 %v685_v5  ;;  %v693_v14 = vunpack.c.h.bf16 %v735_v13  ;;  %v692_v15 = vunpack.c.l.bf16 %v735_v13  ;;  %v701_v25 = vunpack.c.h.bf16 %v736_v24  ;;  %v700_v26 = vunpack.c.l.bf16 %v736_v24  ;;  %v737_v35 = vld [vmem:[#allocation6 + $0x38] sm:$0xff]   ;;  %v738_v46 = vld [vmem:[#allocation6 + $0x48] sm:$0xff]   ;;  %v711_v49 = vld [vmem:[#allocation6 + $0x40] sm:$0xff]   ;;  %s660_s1 = sshll.u32 %s936_s0, 4  ;;  %s661_s1 = int_to_ptr.vmem [resolvable:$true] %s660_s1 }
  0x1f   :  { %778 = vmatprep.subr.mxu0 %v934_v0  ;;  %860 = vpow2.f32 %v670_v6  ;;  %v697_v28 = vunpack.c.h.bf16 %v695_v27  ;;  %v696_v29 = vunpack.c.l.bf16 %v695_v27  ;;  %v709_v36 = vunpack.c.h.bf16 %v737_v35  ;;  %v739_v57 = vld [vmem:[#allocation6 + $0x58] sm:$0xff]   ;;  %v719_v60 = vld [vmem:[#allocation6 + $0x50] sm:$0xff]   ;;  %v740_v5 = vld [vmem:[#allocation6 + $0x68] sm:$0xff]   ;;  %s904_s22 = scalar_lea.vmem %s661_s1, 128  ;;  %p909_p11 = scmp.lt.s32.totalorder %s661_s1, %s661_s1 }
  0x20   :  { %779 = vmatpush3.msra.mxu0 %v684_v4  ;;  %788 = vmatpush3.msra.mxu1 %v693_v14  ;;  %v708_v37 = vunpack.c.l.bf16 %v737_v35  ;;  %v705_v39 = vunpack.c.h.bf16 %v703_v38  ;;  %v704_v40 = vunpack.c.l.bf16 %v703_v38  ;;  %v717_v47 = vunpack.c.h.bf16 %v738_v46  ;;  %p905_p10 = scmp.ne.s32.totalorder %s661_s1, %s904_s22  ;;  %p910_p12 = scmp.lt.s32.totalorder %s904_s22, %s904_s22 }
  0x21   :  { %780 = vmatprep.subr.mxu0 %v934_v0  ;;  %789 = vmatprep.subr.mxu1 %v934_v0  ;;  %v716_v48 = vunpack.c.l.bf16 %v738_v46  ;;  %v713_v50 = vunpack.c.h.bf16 %v711_v49  ;;  %v712_v51 = vunpack.c.l.bf16 %v711_v49  ;;  %v725_v58 = vunpack.c.h.bf16 %v739_v57 }
  0x22   :  { %781 = vmatpush3.msra.mxu0 %v681_v7  ;;  %790 = vmatpush3.msra.mxu1 %v692_v15  ;;  %v724_v59 = vunpack.c.l.bf16 %v739_v57  ;;  %v721_v61 = vunpack.c.h.bf16 %v719_v60  ;;  %v720_v62 = vunpack.c.l.bf16 %v719_v60  ;;  %v733_v6 = vunpack.c.h.bf16 %v740_v5  ;;  %p911_p13 = por %p910_p12, %p909_p11 }
  0x23   :  { %782 = vmatprep.subr.mxu0 %v934_v0  ;;  %791 = vmatprep.subr.mxu1 %v934_v0  ;;  %v732_v7 = vunpack.c.l.bf16 %v740_v5 }
  0x24   :  { %783 = vmatpush3.msra.mxu0 %v680_v8  ;;  %792 = vmatpush3.msra.mxu1 %v689_v17  ;;  %v727_v8 = vld [vmem:[#allocation6 + $0x60] sm:$0xff]   ;;  %p912_p0 = pnand %p911_p13, %p905_p10 }
  0x25   :  { %798 = vmatprep.subr.mxu0 %v934_v0  ;;  %793 = vmatprep.subr.mxu1 %v934_v0 }
  0x26   :  { %794 = vmatpush3.msra.mxu1 %v688_v18 }
  0x27   :  { %809 = vmatprep.subr.mxu1 %v934_v0 }
  0x2c   :  { %v861_v9 = vpop.eup %860 }
  0x2d   :  { %v46_v10 = vadd.f32 1.0, %v861_v9  ;;  %v729_v9 = vunpack.c.h.bf16 %v727_v8 }
  0x2f   :  { %862 = vrcp.f32 %v46_v10  ;;  %v728_v10 = vunpack.c.l.bf16 %v727_v8 }
  0x3c   :  { %v863_v11 = vpop.eup %862 }
  0x3d   :  { %49 = vst [vmem:[#allocation2] sm:$0x1] %v863_v11 }
  0x44   :  { %v50_v12 = vld [vmem:[#allocation2] sm:$0x1] }
  0x45   :  { %785 = vmatmul.mubr.msk.f32.vlgmr.msra.gmra.mxu0 %vm59_vm1, %v50_v12 }
  0x46   :  { %806 = vmatprep.mubr.msk.f32.mxu0 %vm935_vm0, %v934_v0  ;;  %799 = vmatpush3.msra.mxu0 %v701_v25 }
  0x47   :  { %800 = vmatprep.subr.mxu0 %v934_v0 }
  0x48   :  { %801 = vmatpush3.msra.mxu0 %v700_v26 }
  0x49   :  { %802 = vmatprep.subr.mxu0 %v934_v0 }
  0x4a   :  { %803 = vmatpush3.msra.mxu0 %v697_v28 }
  0x4b   :  { %804 = vmatprep.subr.mxu0 %v934_v0 }
  0x4c   :  { %805 = vmatpush3.msra.mxu0 %v696_v29 }
  0x4d   :  { %820 = vmatprep.subr.mxu0 %v934_v0 }
 0x105   :  { %v129_v19 = vpop.f32.mrf.mxu0 }
 0x106   :  { %v133_v20 = vadd.f32 %v129_v19, %v50_v12 }
 0x107   :  { %v786_v21 = vpop.f32.mrf.mxu0 }
 0x108   :  { %v134_v22 = vmax.f32 %v133_v20, 1e-05 }
 0x10a   :  { %v135_v23 = vmin.f32 %v134_v22, 0.99999 }
 0x10c   :  { %136 = vst [vmem:[#allocation8] sm:$0x1] %v135_v23  ;;  %796 = vmatmul.mubr.msk.f32.vlgmr.msra.gmra.mxu1 %vm59_vm1, %v135_v23 }
 0x10d   :  { %817 = vmatprep.mubr.msk.f32.mxu1 %vm935_vm0, %v934_v0  ;;  %810 = vmatpush3.msra.mxu1 %v709_v36 }
 0x10e   :  { %811 = vmatprep.subr.mxu1 %v934_v0 }
 0x10f   :  { %812 = vmatpush3.msra.mxu1 %v708_v37 }
 0x110   :  { %813 = vmatprep.subr.mxu1 %v934_v0 }
 0x111   :  { %814 = vmatpush3.msra.mxu1 %v705_v39 }
 0x112   :  { %815 = vmatprep.subr.mxu1 %v934_v0 }
 0x113   :  { %816 = vmatpush3.msra.mxu1 %v704_v40 }
 0x114   :  { %831 = vmatprep.subr.mxu1 %v934_v0 }
 0x1cc   :  { %v215_v30 = vpop.f32.mrf.mxu1 }
 0x1cd   :  { %v219_v31 = vadd.f32 %v215_v30, %v135_v23 }
 0x1ce   :  { %v797_v32 = vpop.f32.mrf.mxu1 }
 0x1cf   :  { %v220_v33 = vmax.f32 %v219_v31, 1e-05 }
 0x1d1   :  { %v221_v34 = vmin.f32 %v220_v33, 0.99999 }
 0x1d3   :  { %222 = vst [vmem:[#allocation8 + $0x1] sm:$0x1] %v221_v34  ;;  %807 = vmatmul.mubr.msk.f32.vlgmr.msra.gmra.mxu0 %vm59_vm1, %v221_v34 }
 0x1d4   :  { %828 = vmatprep.mubr.msk.f32.mxu0 %vm935_vm0, %v934_v0  ;;  %821 = vmatpush3.msra.mxu0 %v717_v47 }
 0x1d5   :  { %822 = vmatprep.subr.mxu0 %v934_v0 }
 0x1d6   :  { %823 = vmatpush3.msra.mxu0 %v716_v48 }
 0x1d7   :  { %824 = vmatprep.subr.mxu0 %v934_v0 }
 0x1d8   :  { %825 = vmatpush3.msra.mxu0 %v713_v50 }
 0x1d9   :  { %826 = vmatprep.subr.mxu0 %v934_v0 }
 0x1da   :  { %827 = vmatpush3.msra.mxu0 %v712_v51 }
 0x1db   :  { %842 = vmatprep.subr.mxu0 %v934_v0 }
 0x293   :  { %v301_v41 = vpop.f32.mrf.mxu0 }
 0x294   :  { %v305_v42 = vadd.f32 %v301_v41, %v221_v34 }
 0x295   :  { %v808_v43 = vpop.f32.mrf.mxu0 }
 0x296   :  { %v306_v44 = vmax.f32 %v305_v42, 1e-05 }
 0x298   :  { %v307_v45 = vmin.f32 %v306_v44, 0.99999 }
 0x29a   :  { %308 = vst [vmem:[#allocation8 + $0x2] sm:$0x1] %v307_v45  ;;  %818 = vmatmul.mubr.msk.f32.vlgmr.msra.gmra.mxu1 %vm59_vm1, %v307_v45 }
 0x29b   :  { %839 = vmatprep.mubr.msk.f32.mxu1 %vm935_vm0, %v934_v0  ;;  %832 = vmatpush3.msra.mxu1 %v725_v58 }
 0x29c   :  { %833 = vmatprep.subr.mxu1 %v934_v0 }
 0x29d   :  { %834 = vmatpush3.msra.mxu1 %v724_v59 }
 0x29e   :  { %835 = vmatprep.subr.mxu1 %v934_v0 }
 0x29f   :  { %836 = vmatpush3.msra.mxu1 %v721_v61 }
 0x2a0   :  { %837 = vmatprep.subr.mxu1 %v934_v0 }
 0x2a1   :  { %838 = vmatpush3.msra.mxu1 %v720_v62 }
 0x35a   :  { %v387_v52 = vpop.f32.mrf.mxu1 }
 0x35b   :  { %v391_v53 = vadd.f32 %v387_v52, %v307_v45 }
 0x35c   :  { %v819_v54 = vpop.f32.mrf.mxu1 }
 0x35d   :  { %v392_v55 = vmax.f32 %v391_v53, 1e-05 }
 0x35f   :  { %v393_v56 = vmin.f32 %v392_v55, 0.99999 }
 0x361   :  { %394 = vst [vmem:[#allocation8 + $0x3] sm:$0x1] %v393_v56  ;;  %829 = vmatmul.mubr.msk.f32.vlgmr.msra.gmra.mxu0 %vm59_vm1, %v393_v56 }
 0x362   :  { %850 = vmatprep.mubr.msk.f32.mxu0 %vm935_vm0, %v934_v0  ;;  %843 = vmatpush3.msra.mxu0 %v733_v6 }
 0x363   :  { %844 = vmatprep.subr.mxu0 %v934_v0 }
 0x364   :  { %845 = vmatpush3.msra.mxu0 %v732_v7 }
 0x365   :  { %846 = vmatprep.subr.mxu0 %v934_v0 }
 0x366   :  { %847 = vmatpush3.msra.mxu0 %v729_v9 }
 0x367   :  { %848 = vmatprep.subr.mxu0 %v934_v0 }
 0x368   :  { %849 = vmatpush3.msra.mxu0 %v728_v10 }
 0x421   :  { %v473_v63 = vpop.f32.mrf.mxu0 }
 0x422   :  { %v477_v1 = vadd.f32 %v473_v63, %v393_v56 }
 0x423   :  { %v830_v2 = vpop.f32.mrf.mxu0 }
 0x424   :  { %v478_v3 = vmax.f32 %v477_v1, 1e-05 }
 0x426   :  { %v479_v4 = vmin.f32 %v478_v3, 0.99999 }
 0x428   :  { %480 = vst [vmem:[#allocation8 + $0x4] sm:$0x1] %v479_v4  ;;  %840 = vmatmul.mubr.msk.f32.vlgmr.msra.gmra.mxu1 %vm59_vm1, %v479_v4 }
 0x4e8   :  { %v559_v11 = vpop.f32.mrf.mxu1 }
 0x4e9   :  { %v563_v12 = vadd.f32 %v559_v11, %v479_v4 }
 0x4ea   :  { %v841_v13 = vpop.f32.mrf.mxu1 }
 0x4eb   :  { %v564_v14 = vmax.f32 %v563_v12, 1e-05 }
 0x4ed   :  { %v565_v15 = vmin.f32 %v564_v14, 0.99999 }
 0x4ef   :  { %566 = vst [vmem:[#allocation8 + $0x5] sm:$0x1] %v565_v15  ;;  %851 = vmatmul.mubr.msk.f32.vlgmr.msra.gmra.mxu0 %vm59_vm1, %v565_v15 }
 0x5af   :  { %v645_v16 = vpop.f32.mrf.mxu0 }
 0x5b0   :  { %v649_v17 = vadd.f32 %v645_v16, %v565_v15 }
 0x5b1   :  { %v852_v18 = vpop.f32.mrf.mxu0 }
 0x5b2   :  { %v650_v19 = vmax.f32 %v649_v17, 1e-05 }
 0x5b4   :  { %v651_v20 = vmin.f32 %v650_v19, 0.99999 }
 0x5b6   :  { %652 = vst [vmem:[#allocation8 + $0x6] sm:$0x1] %v651_v20  ;;  %653 = vst [vmem:[#allocation2] sm:$0x1] %v651_v20 }
 0x5b7   :  { %915 = shalt.err (!%p912_p0)
}
 0x5b8   :  { %663 = dma.vmem_to_hbm [thread:$0]  %s661_s1, 128, %s1012_s2, [#allocation5]  }
 0x5b9   :  { %928 = dma.done.wait [#allocation5], 128  }
 0x5ba   :  { %929 = vsyncadd [#allocation5], 4294967168 }
 0x5bb   :  { %667 = vsyncpa [#allocation4], 1 }
 0x5bc   :  { %668 = vsyncpa [#allocation7], 1 }
 0x5bd   :  { %669 = vsyncpa [#allocation5], 1 }

</bundles_post_ra>
